<compile_context>
chip_gen: v5e
topology: v5e:2x2
jax: 0.10.0
libtpu: 0.0.40
codegen_flags: <defaults>
</compile_context>

<pallas_src>
import functools

import jax
import jax.numpy as jnp
from jax.experimental import pallas as pl
from jax.experimental.pallas import tpu as pltpu

_LANES = 1024                  # lane-dense last dim (8 full vregs wide)
_TARGET_BLOCK_BYTES = 4 << 20  # ~4 MiB per block (per review, good on v6e/v7x)


def _satlu_kernel(x_ref, o_ref, *, lower, upper):
    x = x_ref[...]
    lo = jnp.asarray(lower, dtype=x.dtype)
    hi = jnp.asarray(upper, dtype=x.dtype)
    o_ref[...] = jnp.minimum(jnp.maximum(x, lo), hi)


def _round_up(n, m):
    return -(-n // m) * m


def _satlu_2d(x2d, lower, upper, inplace):
    """Clamp a lane-dense 2-D (rows, _LANES) array with a 1-D streaming grid."""
    rows, lanes = x2d.shape
    itemsize = x2d.dtype.itemsize
    # Native sublane packing multiple: 8 (4B), 16 (2B), 32 (1B) dtypes.
    sublane = max(8, 32 // max(itemsize, 1))

    if rows <= sublane:
        # Tiny tensor: single block covering the whole (rows, lanes) array
        # (block == full array dims is always a legal block shape).
        tile_r = rows
    else:
        # Target ~4 MiB per block, sized by bytes so bf16/int8 keep the same
        # DMA/step-overhead ratio as f32 ...
        target_r = max(sublane, _TARGET_BLOCK_BYTES // (lanes * itemsize))
        # ... but guarantee >= 2 grid steps so v7x's second TensorCore gets
        # work (each TC has its own HBM path); no-op on single-TC v5e/v6e.
        half_r = _round_up(_round_up(rows, 2) // 2, sublane)
        tile_r = max(sublane, min(target_r, half_r))

    grid = (pl.cdiv(rows, tile_r),)  # partial last block handled by Pallas
    kernel = functools.partial(_satlu_kernel, lower=lower, upper=upper)

    return pl.pallas_call(
        kernel,
        out_shape=jax.ShapeDtypeStruct((rows, lanes), x2d.dtype),
        grid_spec=pltpu.PrefetchScalarGridSpec(
            num_scalar_prefetch=0,
            grid=grid,
            in_specs=[pl.BlockSpec((tile_r, lanes), lambda i: (i, 0))],
            out_specs=pl.BlockSpec((tile_r, lanes), lambda i: (i, 0)),
        ),
        compiler_params=pltpu.CompilerParams(
            dimension_semantics=("parallel",),
            # 16 MiB of double-buffered in+out blocks; raise above v5e's
            # 16 MiB default scoped limit (safe on all generations).
            vmem_limit_bytes=32 << 20,
        ),
        cost_estimate=pl.CostEstimate(
            flops=2 * rows * lanes,          # max + min per element
            transcendentals=0,
            bytes_accessed=2 * rows * lanes * itemsize,
        ),
        input_output_aliases=({0: 0} if inplace else {}),
    )(x2d)


def satlu(x, lower=0.0, upper=255.0, inplace=False):
    """SatLU forward: clamp(x, lower, upper) == F.hardtanh(x, lower, upper)."""
    orig_shape = x.shape
    total = x.size
    if total == 0:
        return x

    flat = x.reshape(total)               # free contiguous bitcast
    main = (total // _LANES) * _LANES
    rem = total - main

    if rem == 0:
        # Common case: fully lane-dense view, zero wrapper-side copies.
        out2d = _satlu_2d(flat.reshape(main // _LANES, _LANES),
                          lower, upper, inplace)
        return out2d.reshape(orig_shape)

    if main == 0:
        # < 1024 elements: not worth a kernel launch.
        return jnp.clip(x, lower, upper).astype(x.dtype)

    # Rare non-divisible case: kernel on the 1024-divisible prefix, plain
    # clip on the short tail (avoids pad + slice-back of the whole tensor).
    head = _satlu_2d(flat[:main].reshape(main // _LANES, _LANES),
                     lower, upper, False)
    tail = jnp.clip(flat[main:], lower, upper).astype(x.dtype)
    return jnp.concatenate([head.reshape(main), tail]).reshape(orig_shape)


if __name__ == "__main__":
    key = jax.random.PRNGKey(0)
    # Small NCHW input, scaled so values land below 0 and above 255 to
    # exercise both saturation bounds.
    x = jax.random.normal(key, (2, 4, 16, 16), dtype=jnp.float32) * 200.0

    y = satlu(x, lower=0, upper=255)
    y = jax.block_until_ready(y)

    # Reference check against plain JAX clip.
    y_ref = jnp.clip(x, 0.0, 255.0)
    assert y.shape == x.shape and y.dtype == x.dtype
    assert bool(jnp.allclose(y, y_ref)), "mismatch vs reference clip"

    print("KERNEL_OK")
</pallas_src>

<mosaic_0001>
module attributes {stable_mosaic.version = 11 : i64} {
  func.func @_satlu_kernel(%arg0: i32, %arg1: memref<2x1024xf32, #tpu.memory_space<vmem>>, %arg2: memref<2x1024xf32, #tpu.memory_space<vmem>>) attributes {dimension_semantics = [#tpu.dimension_semantics<parallel>], iteration_bounds = array<i64: 1>, scalar_prefetch = 0 : i64, scratch_operands = 0 : i64, tpu.core_type = #tpu.core_type<tc>, window_params = [{transform_indices = @transform_0, window_bounds = array<i64: 2, 1024>}, {transform_indices = @transform_1, window_bounds = array<i64: 2, 1024>}]} {
    %c0 = arith.constant 0 : index
    %c0_0 = arith.constant 0 : index
    %0 = vector.load %arg1[%c0, %c0_0] : memref<2x1024xf32, #tpu.memory_space<vmem>>, vector<2x1024xf32>
    %cst = arith.constant 0.000000e+00 : f32
    %1 = vector.broadcast %cst : f32 to vector<2x1024xf32>
    %2 = arith.maximumf %0, %1 : vector<2x1024xf32>
    %cst_1 = arith.constant 2.550000e+02 : f32
    %3 = vector.broadcast %cst_1 : f32 to vector<2x1024xf32>
    %4 = arith.minimumf %2, %3 : vector<2x1024xf32>
    %c0_2 = arith.constant 0 : index
    %c0_3 = arith.constant 0 : index
    %5 = vector.load %arg2[%c0_2, %c0_3] : memref<2x1024xf32, #tpu.memory_space<vmem>>, vector<2x1024xf32>
    tpu.vector_store %arg2[%c0_2, %c0_3], %4 {strides = array<i32>} : memref<2x1024xf32, #tpu.memory_space<vmem>>, vector<2x1024xf32>,
    return
  }
  func.func @transform_0(%arg0: i32) -> (i32, i32) {
    %c0_i32 = arith.constant 0 : i32
    %c0_i32_0 = arith.constant 0 : i32
    return %arg0, %c0_i32 : i32, i32
  }
  func.func @transform_1(%arg0: i32) -> (i32, i32) {
    %c0_i32 = arith.constant 0 : i32
    %c0_i32_0 = arith.constant 0 : i32
    return %arg0, %c0_i32 : i32, i32
  }
}

</mosaic_0001>

<bundles_post_ra>
// kernel: tpu_custom_call.1
= control target key start
LH: loop header
LB: loop body
LE: loop exit
PB: predicated region body
PF: predicated region fallthrough
CT: control target
= control target key end

     0   :  { %6 = vsyncpa [#allocation3], 0  ;;  %s120_s0 = inlined_call_operand.hbm [shape: f32[2,1024], index: 0, kind: input, shape index: {}]   ;;  %s121_s1 = inlined_call_operand.hbm [shape: f32[2,1024], index: 1, kind: output, shape index: {}]  }
   0x1   :  { %7 = vsyncpa [#allocation4], 0  ;;  %s13_s8 = sshll.u32 %s120_s0, 4  ;;  %s102_s9 = smov [#allocation2]   ;;  %s14_s8 = int_to_ptr.hbm [resolvable:$true] %s13_s8 }
   0x2   :  { %s15_s10 = sshll.u32 %s102_s9, 4  ;;  %s16_s10 = int_to_ptr.vmem [resolvable:$true] %s15_s10 }
   0x3   :  { %18 = dma.hbm_to_vmem [thread:$0]  %s14_s8, 256, %s16_s10, [#allocation3]  }
   0x4   :  { %98 = dma.done.wait [#allocation3], 256  }
   0x5   :  { %99 = vsyncadd [#allocation3], 4294967040  ;;  %v23_v0 = vld [vmem:[#allocation2] sm:$0xff]  ;;  %v24_v1 = vld [vmem:[#allocation2 + $0x8] sm:$0xff]  ;;  %s103_s11 = smov [#allocation5]   ;;  %s38_s15 = sshll.u32 %s121_s1, 4  ;;  %s39_s15 = int_to_ptr.hbm [resolvable:$true] %s38_s15 }
   0x6   :  { %v25_v2 = vmax.f32 %v23_v0, 0.0  ;;  %v26_v3 = vmax.f32 %v24_v1, 0.0  ;;  %s36_s12 = sshll.u32 %s103_s11, 4  ;;  %s37_s12 = int_to_ptr.vmem [resolvable:$true] %s36_s12 }
   0x8   :  { %v27_v4 = vmin.f32 %v25_v2, 255.0  ;;  %v28_v5 = vmin.f32 %v26_v3, 255.0 }
   0xa   :  { %29 = vst [vmem:[#allocation5] sm:$0xff] %v27_v4 }
   0xb   :  { %30 = vst [vmem:[#allocation5 + $0x8] sm:$0xff] %v28_v5 }
   0xc   :  { %41 = dma.vmem_to_hbm [thread:$0]  %s37_s12, 256, %s39_s15, [#allocation4]  }
   0xd   :  { %100 = dma.done.wait [#allocation4], 256  }
   0xe   :  { %101 = vsyncadd [#allocation4], 4294967040 }
   0xf   :  { %46 = vsyncpa [#allocation3], 1 }
  0x10   :  { %47 = vsyncpa [#allocation4], 1 }

</bundles_post_ra>
